<compile_context>
chip_gen: v7x
topology: tpu7x:2x2x1
jax: 0.10.0
libtpu: 0.0.40
codegen_flags: <defaults>
</compile_context>

<pallas_src>
import jax
import jax.numpy as jnp
from jax.experimental import pallas as pl
from jax.experimental.pallas import tpu as pltpu


def _generalized_forces_kernel(q_ref, v_ref, u_ref,
                               neg_eta_ref, blin_t_ref,
                               w1q_ref, w1v_ref, w1u_ref, b1_ref,
                               w2_ref, b2_ref,
                               o_ref):
    tb = q_ref.shape[0]
    chunk = min(128, tb)            # keep the (chunk, n_mlp*H) f32 intermediate at <=32 vregs
    n_chunks = tb // chunk

    for c in range(n_chunks):       # static unroll; chunks are independent (end at their store)
        rows = pl.ds(c * chunk, chunk)
        q = q_ref[rows, :]          # (chunk, qdim)
        v = v_ref[rows, :]          # (chunk, qdim)
        u = u_ref[rows, :]          # (chunk, udim)

        # --- all n_mlp MLP force nets, collapsed into two large dots (concat fused via the
        #     split-W1 row blocks; W2 contraction K = n_mlp*H = 256 fills the MXU depth) ---
        h = (jnp.dot(q, w1q_ref[...], preferred_element_type=jnp.float32)
             + jnp.dot(v, w1v_ref[...], preferred_element_type=jnp.float32)
             + jnp.dot(u, w1u_ref[...], preferred_element_type=jnp.float32)
             + b1_ref[...])
        h = jnp.maximum(h, 0.0)
        acc = jnp.dot(h, w2_ref[...], preferred_element_type=jnp.float32) + b2_ref[...]

        # --- ControlAffineLinearForce:  + u @ B_lin.T  (one tiny K=udim dot) ---
        acc = acc + jnp.dot(u, blin_t_ref[...], preferred_element_type=jnp.float32)

        # --- ViscousJointDampingForce:  + (-softplus(eta)) * v  (pure VPU, no MXU push) ---
        acc = acc + neg_eta_ref[...] * v

        o_ref[rows, :] = acc.astype(o_ref.dtype)


def _choose_tb(B, tb_max=512):
    """Largest batch tile that divides B, is a multiple of 8, is <=128 or a multiple of 128
    (for the in-kernel 128-row sub-chunking), and - if possible - leaves >=2 grid steps so the
    "parallel" batch axis can be sharded across v7x's 2 TensorCores."""
    cands = [t for t in range(8, min(tb_max, B) + 1, 8)
             if B % t == 0 and (t <= 128 or t % 128 == 0)]
    if not cands:
        return None
    multi = [t for t in cands if B // t >= 2]
    return max(multi) if multi else max(cands)


def generalized_forces_forward(q, v, u, packed):
    """Forward pass of GeneralizedForces. Returns (B, qdim, 1)."""
    B, qdim = q.shape
    udim = u.shape[1]
    nH = packed["w1q"].shape[1]          # n_mlp * hidden

    # TODO(synk): ragged batches (B not a multiple of 8) would need a cdiv grid + masked tail.
    assert B % 8 == 0, f"batch {B} must be a multiple of the f32 sublane (8)"
    tb = _choose_tb(B)
    assert tb is not None and B % tb == 0

    weight_arrays = [packed[k] for k in
                     ("neg_eta", "blin_t", "w1q", "w1v", "w1u", "b1", "w2", "b2")]
    weight_bytes = sum(int(a.size) * a.dtype.itemsize for a in weight_arrays)
    tile_bytes = 4 * tb * (2 * qdim + udim + qdim)        # q, v, u in + out per grid step
    # Constant-index weight blocks are still double-buffered by the default pipeline.
    vmem_limit = min(64 << 20, max(4 << 20, 4 * (weight_bytes + tile_bytes)))

    in_dim = 2 * qdim + udim
    flops = 2 * B * (in_dim * nH + nH * qdim + udim * qdim + qdim)
    bytes_accessed = 4 * (int(q.size) + int(v.size) + int(u.size) + B * qdim) + weight_bytes

    out2d = pl.pallas_call(
        _generalized_forces_kernel,
        out_shape=jax.ShapeDtypeStruct((B, qdim), q.dtype),
        grid_spec=pltpu.PrefetchScalarGridSpec(
            num_scalar_prefetch=0,
            grid=(B // tb,),
            in_specs=[
                pl.BlockSpec((tb, qdim), lambda b: (b, 0)),   # q
                pl.BlockSpec((tb, qdim), lambda b: (b, 0)),   # v
                pl.BlockSpec((tb, udim), lambda b: (b, 0)),   # u
                pl.BlockSpec((1, qdim), lambda b: (0, 0)),    # -softplus(eta)
                pl.BlockSpec((udim, qdim), lambda b: (0, 0)), # B_lin.T
                pl.BlockSpec((qdim, nH), lambda b: (0, 0)),   # stacked W1, q rows
                pl.BlockSpec((qdim, nH), lambda b: (0, 0)),   # stacked W1, v rows
                pl.BlockSpec((udim, nH), lambda b: (0, 0)),   # stacked W1, u rows
                pl.BlockSpec((1, nH), lambda b: (0, 0)),      # stacked b1
                pl.BlockSpec((nH, qdim), lambda b: (0, 0)),   # stacked W2
                pl.BlockSpec((1, qdim), lambda b: (0, 0)),    # summed b2
            ],
            out_specs=pl.BlockSpec((tb, qdim), lambda b: (b, 0)),
        ),
        compiler_params=pltpu.CompilerParams(
            dimension_semantics=("parallel",),    # shards the batch axis across v7x's 2 TCs
            vmem_limit_bytes=int(vmem_limit),
        ),
        cost_estimate=pl.CostEstimate(flops=flops, transcendentals=0,
                                      bytes_accessed=bytes_accessed),
    )(q, v, u,
      packed["neg_eta"], packed["blin_t"],
      packed["w1q"], packed["w1v"], packed["w1u"], packed["b1"],
      packed["w2"], packed["b2"])

    return out2d[:, :, None]                     # unsqueeze(2) -> (B, qdim, 1)


def init_params(key, qdim, udim, hidden, n_mlp, dtype=jnp.float32):
    """Semantic (unpacked) parameters for the canonical force set."""
    assert n_mlp >= 1, "at least one MLP force net (avoids zero-sized kernel operands)"
    in_dim = 2 * qdim + udim
    ks = jax.random.split(key, 6)

    def rnd(k, shape, fan_in):
        return jax.random.normal(k, shape, dtype) / jnp.sqrt(jnp.asarray(fan_in, dtype))

    return {
        "B_lin": rnd(ks[0], (qdim, udim), udim),                 # ControlAffineLinearForce
        "eta_raw": jax.random.normal(ks[1], (qdim,), dtype),     # ViscousJointDampingForce
        "W1": rnd(ks[2], (n_mlp, in_dim, hidden), in_dim),       # MLP force nets
        "b1": rnd(ks[3], (n_mlp, hidden), in_dim),
        "W2": rnd(ks[4], (n_mlp, hidden, qdim), hidden),
        "b2": rnd(ks[5], (n_mlp, qdim), hidden),
    }


def pack_params(params, qdim, udim):
    """One-time repack into the kernel layout: stack all n_mlp nets into single big weights
    (W1 along lanes, split by q/v/u rows; W2 along sublanes; b2 summed) and precompute
    -softplus(eta).  NOTE: must be re-run if parameters change (e.g. every training step)."""
    n_mlp, in_dim, H = params["W1"].shape
    assert in_dim == 2 * qdim + udim

    # W1_all[:, i*H:(i+1)*H] = W1_i   -> (in_dim, n_mlp*H)
    w1_all = jnp.transpose(params["W1"], (1, 0, 2)).reshape(in_dim, n_mlp * H)
    # W2_all[i*H:(i+1)*H, :] = W2_i   -> (n_mlp*H, qdim)
    w2_all = params["W2"].reshape(n_mlp * H, qdim)

    neg_eta = -jax.nn.softplus(params["eta_raw"]).reshape(1, qdim)
    return {
        "neg_eta": neg_eta,                                  # (1, qdim)    viscous damping
        "blin_t": params["B_lin"].T,                         # (udim, qdim) control-affine
        "w1q": w1_all[:qdim, :],                             # (qdim, n_mlp*H)
        "w1v": w1_all[qdim:2 * qdim, :],                     # (qdim, n_mlp*H)
        "w1u": w1_all[2 * qdim:, :],                         # (udim, n_mlp*H)
        "b1": params["b1"].reshape(1, n_mlp * H),            # (1, n_mlp*H)
        "w2": w2_all,                                        # (n_mlp*H, qdim)
        "b2": params["b2"].sum(axis=0, keepdims=True),       # (1, qdim)
    }


if __name__ == "__main__":
    # Small shapes consistent with the module: q/v (B, qdim), controls u (B, udim).
    B, qdim, udim = 256, 8, 4
    hidden, n_mlp = 128, 2

    key = jax.random.PRNGKey(0)
    kq, kv, ku, kp = jax.random.split(key, 4)
    q = jax.random.normal(kq, (B, qdim), jnp.float32)
    v = jax.random.normal(kv, (B, qdim), jnp.float32)
    u = jax.random.normal(ku, (B, udim), jnp.float32)

    params = init_params(kp, qdim, udim, hidden, n_mlp)
    packed = pack_params(params, qdim, udim)

    F = generalized_forces_forward(q, v, u, packed)
    jax.block_until_ready(F)
    assert F.shape == (B, qdim, 1), F.shape

    # Pure-JAX reference of GeneralizedForces over the same force set.
    eta = jax.nn.softplus(params["eta_raw"])
    F_ref = u @ params["B_lin"].T - eta * v
    x = jnp.concatenate([q, v, u], axis=-1)
    for i in range(n_mlp):
        h = jnp.maximum(x @ params["W1"][i] + params["b1"][i], 0.0)
        F_ref = F_ref + h @ params["W2"][i] + params["b2"][i]
    F_ref = F_ref[:, :, None]

    assert jnp.allclose(F, F_ref, atol=1e-4, rtol=1e-4), \
        float(jnp.max(jnp.abs(F - F_ref)))
    print("KERNEL_OK")
</pallas_src>

<mosaic_0001>
module attributes {stable_mosaic.version = 11 : i64} {
  func.func @_generalized_forces_kernel(%arg0: i32, %arg1: memref<128x8xf32, #tpu.memory_space<vmem>>, %arg2: memref<128x8xf32, #tpu.memory_space<vmem>>, %arg3: memref<128x4xf32, #tpu.memory_space<vmem>>, %arg4: memref<1x8xf32, #tpu.memory_space<vmem>>, %arg5: memref<4x8xf32, #tpu.memory_space<vmem>>, %arg6: memref<8x256xf32, #tpu.memory_space<vmem>>, %arg7: memref<8x256xf32, #tpu.memory_space<vmem>>, %arg8: memref<4x256xf32, #tpu.memory_space<vmem>>, %arg9: memref<1x256xf32, #tpu.memory_space<vmem>>, %arg10: memref<256x8xf32, #tpu.memory_space<vmem>>, %arg11: memref<1x8xf32, #tpu.memory_space<vmem>>, %arg12: memref<128x8xf32, #tpu.memory_space<vmem>>) attributes {dimension_semantics = [#tpu.dimension_semantics<parallel>], iteration_bounds = array<i64: 2>, scalar_prefetch = 0 : i64, scratch_operands = 0 : i64, tpu.core_type = #tpu.core_type<tc>, window_params = [{transform_indices = @transform_0, window_bounds = array<i64: 128, 8>}, {transform_indices = @transform_1, window_bounds = array<i64: 128, 8>}, {transform_indices = @transform_2, window_bounds = array<i64: 128, 4>}, {pipeline_mode = #tpu.pipeline_mode<synchronous>, transform_indices = @transform_3, window_bounds = array<i64: 1, 8>}, {pipeline_mode = #tpu.pipeline_mode<synchronous>, transform_indices = @transform_4, window_bounds = array<i64: 4, 8>}, {pipeline_mode = #tpu.pipeline_mode<synchronous>, transform_indices = @transform_5, window_bounds = array<i64: 8, 256>}, {pipeline_mode = #tpu.pipeline_mode<synchronous>, transform_indices = @transform_6, window_bounds = array<i64: 8, 256>}, {pipeline_mode = #tpu.pipeline_mode<synchronous>, transform_indices = @transform_7, window_bounds = array<i64: 4, 256>}, {pipeline_mode = #tpu.pipeline_mode<synchronous>, transform_indices = @transform_8, window_bounds = array<i64: 1, 256>}, {pipeline_mode = #tpu.pipeline_mode<synchronous>, transform_indices = @transform_9, window_bounds = array<i64: 256, 8>}, {pipeline_mode = #tpu.pipeline_mode<synchronous>, transform_indices = @transform_10, window_bounds = array<i64: 1, 8>}, {transform_indices = @transform_11, window_bounds = array<i64: 128, 8>}]} {
    %c0 = arith.constant 0 : index
    %c0_0 = arith.constant 0 : index
    %0 = vector.load %arg1[%c0, %c0_0] : memref<128x8xf32, #tpu.memory_space<vmem>>, vector<128x8xf32>
    %c0_1 = arith.constant 0 : index
    %c0_2 = arith.constant 0 : index
    %1 = vector.load %arg2[%c0_1, %c0_2] : memref<128x8xf32, #tpu.memory_space<vmem>>, vector<128x8xf32>
    %c0_3 = arith.constant 0 : index
    %c0_4 = arith.constant 0 : index
    %2 = vector.load %arg3[%c0_3, %c0_4] : memref<128x4xf32, #tpu.memory_space<vmem>>, vector<128x4xf32>
    %c0_5 = arith.constant 0 : index
    %c0_6 = arith.constant 0 : index
    %3 = vector.load %arg6[%c0_5, %c0_6] : memref<8x256xf32, #tpu.memory_space<vmem>>, vector<8x256xf32>
    %cst = arith.constant dense<0.000000e+00> : vector<128x256xf32>
    %4 = tpu.matmul %0, %3, %cst {dimension_numbers = #tpu.dot_dimension_numbers<[1], [0], [0], [1], [0, 0, 1, 1], [], []>} : vector<128x8xf32>, vector<8x256xf32>, vector<128x256xf32> -> vector<128x256xf32>
    %c0_7 = arith.constant 0 : index
    %c0_8 = arith.constant 0 : index
    %5 = vector.load %arg7[%c0_7, %c0_8] : memref<8x256xf32, #tpu.memory_space<vmem>>, vector<8x256xf32>
    %cst_9 = arith.constant dense<0.000000e+00> : vector<128x256xf32>
    %6 = tpu.matmul %1, %5, %cst_9 {dimension_numbers = #tpu.dot_dimension_numbers<[1], [0], [0], [1], [0, 0, 1, 1], [], []>} : vector<128x8xf32>, vector<8x256xf32>, vector<128x256xf32> -> vector<128x256xf32>
    %7 = arith.addf %4, %6 : vector<128x256xf32>
    %c0_10 = arith.constant 0 : index
    %c0_11 = arith.constant 0 : index
    %8 = vector.load %arg8[%c0_10, %c0_11] : memref<4x256xf32, #tpu.memory_space<vmem>>, vector<4x256xf32>
    %cst_12 = arith.constant dense<0.000000e+00> : vector<128x256xf32>
    %9 = tpu.matmul %2, %8, %cst_12 {dimension_numbers = #tpu.dot_dimension_numbers<[1], [0], [0], [1], [0, 0, 1, 1], [], []>} : vector<128x4xf32>, vector<4x256xf32>, vector<128x256xf32> -> vector<128x256xf32>
    %10 = arith.addf %7, %9 : vector<128x256xf32>
    %c0_13 = arith.constant 0 : index
    %c0_14 = arith.constant 0 : index
    %11 = vector.load %arg9[%c0_13, %c0_14] : memref<1x256xf32, #tpu.memory_space<vmem>>, vector<1x256xf32>
    %12 = vector.broadcast %11 : vector<1x256xf32> to vector<128x256xf32>
    %13 = arith.addf %10, %12 : vector<128x256xf32>
    %cst_15 = arith.constant 0.000000e+00 : f32
    %14 = vector.broadcast %cst_15 : f32 to vector<128x256xf32>
    %15 = arith.maximumf %13, %14 : vector<128x256xf32>
    %c0_16 = arith.constant 0 : index
    %c0_17 = arith.constant 0 : index
    %16 = vector.load %arg10[%c0_16, %c0_17] : memref<256x8xf32, #tpu.memory_space<vmem>>, vector<256x8xf32>
    %cst_18 = arith.constant dense<0.000000e+00> : vector<128x8xf32>
    %17 = tpu.matmul %15, %16, %cst_18 {dimension_numbers = #tpu.dot_dimension_numbers<[1], [0], [0], [1], [0, 0, 1, 1], [], []>} : vector<128x256xf32>, vector<256x8xf32>, vector<128x8xf32> -> vector<128x8xf32>
    %c0_19 = arith.constant 0 : index
    %c0_20 = arith.constant 0 : index
    %18 = vector.load %arg11[%c0_19, %c0_20] : memref<1x8xf32, #tpu.memory_space<vmem>>, vector<1x8xf32>
    %19 = vector.broadcast %18 : vector<1x8xf32> to vector<128x8xf32>
    %20 = arith.addf %17, %19 : vector<128x8xf32>
    %c0_21 = arith.constant 0 : index
    %c0_22 = arith.constant 0 : index
    %21 = vector.load %arg5[%c0_21, %c0_22] : memref<4x8xf32, #tpu.memory_space<vmem>>, vector<4x8xf32>
    %cst_23 = arith.constant dense<0.000000e+00> : vector<128x8xf32>
    %22 = tpu.matmul %2, %21, %cst_23 {dimension_numbers = #tpu.dot_dimension_numbers<[1], [0], [0], [1], [0, 0, 1, 1], [], []>} : vector<128x4xf32>, vector<4x8xf32>, vector<128x8xf32> -> vector<128x8xf32>
    %23 = arith.addf %20, %22 : vector<128x8xf32>
    %c0_24 = arith.constant 0 : index
    %c0_25 = arith.constant 0 : index
    %24 = vector.load %arg4[%c0_24, %c0_25] : memref<1x8xf32, #tpu.memory_space<vmem>>, vector<1x8xf32>
    %25 = vector.broadcast %24 : vector<1x8xf32> to vector<128x8xf32>
    %26 = arith.mulf %25, %1 : vector<128x8xf32>
    %27 = arith.addf %23, %26 : vector<128x8xf32>
    %c0_26 = arith.constant 0 : index
    %c0_27 = arith.constant 0 : index
    %28 = vector.load %arg12[%c0_26, %c0_27] : memref<128x8xf32, #tpu.memory_space<vmem>>, vector<128x8xf32>
    tpu.vector_store %arg12[%c0_26, %c0_27], %27 {strides = array<i32>} : memref<128x8xf32, #tpu.memory_space<vmem>>, vector<128x8xf32>,
    return
  }
  func.func @transform_0(%arg0: i32) -> (i32, i32) {
    %c0_i32 = arith.constant 0 : i32
    %c0_i32_0 = arith.constant 0 : i32
    return %arg0, %c0_i32 : i32, i32
  }
  func.func @transform_1(%arg0: i32) -> (i32, i32) {
    %c0_i32 = arith.constant 0 : i32
    %c0_i32_0 = arith.constant 0 : i32
    return %arg0, %c0_i32 : i32, i32
  }
  func.func @transform_2(%arg0: i32) -> (i32, i32) {
    %c0_i32 = arith.constant 0 : i32
    %c0_i32_0 = arith.constant 0 : i32
    return %arg0, %c0_i32 : i32, i32
  }
  func.func @transform_3(%arg0: i32) -> (i32, i32) {
    %c0_i32 = arith.constant 0 : i32
    %c0_i32_0 = arith.constant 0 : i32
    %c0_i32_1 = arith.constant 0 : i32
    return %c0_i32, %c0_i32_0 : i32, i32
  }
  func.func @transform_4(%arg0: i32) -> (i32, i32) {
    %c0_i32 = arith.constant 0 : i32
    %c0_i32_0 = arith.constant 0 : i32
    %c0_i32_1 = arith.constant 0 : i32
    return %c0_i32, %c0_i32_0 : i32, i32
  }
  func.func @transform_5(%arg0: i32) -> (i32, i32) {
    %c0_i32 = arith.constant 0 : i32
    %c0_i32_0 = arith.constant 0 : i32
    %c0_i32_1 = arith.constant 0 : i32
    return %c0_i32, %c0_i32_0 : i32, i32
  }
  func.func @transform_6(%arg0: i32) -> (i32, i32) {
    %c0_i32 = arith.constant 0 : i32
    %c0_i32_0 = arith.constant 0 : i32
    %c0_i32_1 = arith.constant 0 : i32
    return %c0_i32, %c0_i32_0 : i32, i32
  }
  func.func @transform_7(%arg0: i32) -> (i32, i32) {
    %c0_i32 = arith.constant 0 : i32
    %c0_i32_0 = arith.constant 0 : i32
    %c0_i32_1 = arith.constant 0 : i32
    return %c0_i32, %c0_i32_0 : i32, i32
  }
  func.func @transform_8(%arg0: i32) -> (i32, i32) {
    %c0_i32 = arith.constant 0 : i32
    %c0_i32_0 = arith.constant 0 : i32
    %c0_i32_1 = arith.constant 0 : i32
    return %c0_i32, %c0_i32_0 : i32, i32
  }
  func.func @transform_9(%arg0: i32) -> (i32, i32) {
    %c0_i32 = arith.constant 0 : i32
    %c0_i32_0 = arith.constant 0 : i32
    %c0_i32_1 = arith.constant 0 : i32
    return %c0_i32, %c0_i32_0 : i32, i32
  }
  func.func @transform_10(%arg0: i32) -> (i32, i32) {
    %c0_i32 = arith.constant 0 : i32
    %c0_i32_0 = arith.constant 0 : i32
    %c0_i32_1 = arith.constant 0 : i32
    return %c0_i32, %c0_i32_0 : i32, i32
  }
  func.func @transform_11(%arg0: i32) -> (i32, i32) {
    %c0_i32 = arith.constant 0 : i32
    %c0_i32_0 = arith.constant 0 : i32
    return %arg0, %c0_i32 : i32, i32
  }
}

</mosaic_0001>

<bundles_post_ra>
// kernel: tpu_custom_call.1
= control target key start
LH: loop header
LB: loop body
LE: loop exit
PB: predicated region body
PF: predicated region fallthrough
CT: control target
= control target key end

     0   :  { %s2099_s17 = smov 0   ;;  %s2754_s0 = inlined_call_operand.vmem [shape: f32[256,8], index: 0, kind: input, shape index: {}]   ;;  %s2755_s1 = inlined_call_operand.vmem [shape: f32[256,8], index: 1, kind: input, shape index: {}]   ;;  %s2756_s2 = inlined_call_operand.vmem [shape: f32[256,4], index: 2, kind: input, shape index: {}]   ;;  %s2757_s3 = inlined_call_operand.vmem [shape: f32[1,8], index: 3, kind: input, shape index: {}]   ;;  %s2758_s4 = inlined_call_operand.vmem [shape: f32[4,8], index: 4, kind: input, shape index: {}]   ;;  %s2759_s5 = inlined_call_operand.vmem [shape: f32[8,256], index: 5, kind: input, shape index: {}]   ;;  %s2760_s6 = inlined_call_operand.vmem [shape: f32[8,256], index: 6, kind: input, shape index: {}]   ;;  %s2761_s7 = inlined_call_operand.vmem [shape: f32[4,256], index: 7, kind: input, shape index: {}]   ;;  %s2762_s8 = inlined_call_operand.vmem [shape: f32[1,256], index: 8, kind: input, shape index: {}]   ;;  %s2763_s9 = inlined_call_operand.vmem [shape: f32[256,8], index: 9, kind: input, shape index: {}]   ;;  %s2764_s10 = inlined_call_operand.vmem [shape: f32[1,8], index: 10, kind: input, shape index: {}]   ;;  %s2765_s11 = inlined_call_operand.vmem [shape: f32[256,8], index: 11, kind: output, shape index: {}]  }
   0x1 LB: > { %s1715_s18 = sadd.s32 4294967295, %s2036_s17   ;;  %p1719_p0 = scmp.ge.s32.totalorder %s2036_s17, 1  ;;  %s2036_s17 = sphi %s2099_s17, %s21_s17  }
   0x2   : > { %p360_p1 = scmp.lt.s32.totalorder %s2036_s17, 3 }
   0x4   : > { %p361_p2 = pnand %p1719_p0, %p360_p1 }
   0x6   : > { %364 = sbr.rel (%p361_p2) target bundleno = 630 (0x276), region = 64 }
   0xd   : > { %v485_v0 = vld [vmem:[%s2760_s6 + $0x8] sm:$0xff]  ;;  %v484_v1 = vld [vmem:[%s2760_s6] sm:$0xff]  ;;  %s1720_s25 = sshll.u32 %s1715_s18, 4  ;;  %v2038_v3 = vmov 0.0   ;;  %vm486_vm0 = vcmask 64512   ;;  %vm957_vm1 = vcmask 1043456  }
   0xe   : > { %v483_v2 = vld [vmem:[%s2759_s5 + $0x8] sm:$0xff]  ;;  %535 = vmatprep.subr.mxu0 %v485_v0  ;;  %599 = vmatprep.mubr.f32.mxu0 %v2038_v3  ;;  %p411_p3 = scmp.lt.s32.totalorder %s1720_s25, 31  ;;  %v905_v4 = vld [vmem:[%s2761_s7] sm:$0xff]  ;;  %v1249_v21 = vld [vmem:[%s2763_s9 + $0x90] sm:$0xff]  ;;  %vm908_vm2 = vcmask 31744  }
   0xf   : > { %536 = vmatpush1.msra.mxu0 %v484_v1  ;;  %1954 = vmatprep.subr.mxu1 %v485_v0  ;;  %v482_v5 = vld [vmem:[%s2759_s5] sm:$0xff]  ;;  %v907_v6 = vcombine.high %v905_v4, %v905_v4  ;;  %v1248_v17 = vld [vmem:[%s2763_s9 + $0x88] sm:$0xff]  ;;  %v1250_v22 = vld [vmem:[%s2763_s9 + $0x98] sm:$0xff] }
  0x10   : > { %744 = vmatprep.subr.mxu0 %v483_v2  ;;  %s2797_s25 = smov (!%p411_p3, %s1720_s25), 31  ;;  %1955 = vmatpush1.msra.mxu1 %v484_v1  ;;  %v1247_v16 = vld [vmem:[%s2763_s9 + $0x80] sm:$0xff]  ;;  %v1232_v20 = vld [vmem:[%s2763_s9 + $0x8] sm:$0xff]  ;;  %v1233_v25 = vld [vmem:[%s2763_s9 + $0x10] sm:$0xff]  ;;  %v1926_v27 = vpack.c.bf16 %v1250_v22, %v1249_v21 }
  0x11   : > { %623 = vmatprep.mubr.f32.mxu1 %v2038_v3  ;;  %s2121_s28 = sshll.u32 %s2797_s25, 3  ;;  %v1231_v18 = vld [vmem:[%s2763_s9] sm:$0xff]  ;;  %v1922_v19 = vpack.c.bf16 %v1248_v17, %v1247_v16  ;;  %v1234_v26 = vld [vmem:[%s2763_s9 + $0x18] sm:$0xff]  ;;  %v1252_v30 = vld [vmem:[%s2763_s9 + $0xa8] sm:$0xff] }
  0x12   : > { %s2127_s12 = scalar_lea.vmem %s2755_s1, %s2121_s28  ;;  %s2167_s18 = scalar_lea.vmem %s2754_s0, %s2121_s28  ;;  %v1924_v24 = vpack.c.bf16 %v1232_v20, %v1231_v18  ;;  %v1928_v28 = vpack.c.bf16 %v1234_v26, %v1233_v25  ;;  %v1251_v29 = vld [vmem:[%s2763_s9 + $0xa0] sm:$0xff]  ;;  %v1236_v32 = vld [vmem:[%s2763_s9 + $0x28] sm:$0xff]  ;;  %v1253_v37 = vld [vmem:[%s2763_s9 + $0xb0] sm:$0xff] }
  0x13   : > { %v2133_v7 = vld [vmem:[%s2127_s12] sm:$0xff]  ;;  %v2139_v8 = vld [vmem:[%s2127_s12 + $0x8] sm:$0xff]  ;;  %v2146_v9 = vld [vmem:[%s2127_s12 + $0x10] sm:$0xff]  ;;  %1923 = vmatprep.subr.bf16.mxu1 %v1922_v19  ;;  %v1930_v35 = vpack.c.bf16 %v1252_v30, %v1251_v29  ;;  %s2369_s14 = scalar_lea.vmem %s2756_s2, %s2121_s28  ;;  %s2666_s15 = scalar_lea.vmem %s2765_s11, %s2121_s28 }
  0x14   : > { %1728 = vmatmul.mubr.msk.f32.vlgmr.msra.gmra.mrb[0].mxu0 %vm486_vm0, %v2133_v7  ;;  %v2149_v10 = vld [vmem:[%s2127_s12 + $0x20] sm:$0xff]  ;;  %v2157_v11 = vld [vmem:[%s2127_s12 + $0x18] sm:$0xff]  ;;  %v2161_v12 = vld [vmem:[%s2127_s12 + $0x28] sm:$0xff] }
  0x15   : > { %745 = vmatpush1.msra.mxu0 %v482_v5  ;;  %605 = vmatprep.mubr.f32.mxu0 %v2038_v3  ;;  %v434_v13 = vld [vmem:[%s2167_s18] sm:$0xff]  ;;  %v2177_v14 = vld [vmem:[%s2127_s12 + $0x30] sm:$0xff]  ;;  %v435_v15 = vld [vmem:[%s2167_s18 + $0x8] sm:$0xff] }
  0x16   : > { %1760 = vmatprep.subr.msk.mxu0 %vm957_vm1, %v907_v6  ;;  %1732 = vmatmul.mubr.msk.f32.vlgmr.msra.gmra.mrb[0].mxu1 %vm486_vm0, %v2149_v10  ;;  %2776 = vst [vmem:[#allocation2_spill] sm:$0xff] %v2177_v14  ;;  %v2204_v23 = vld [vmem:[%s2127_s12 + $0x38] sm:$0xff]  ;;  %v1235_v31 = vld [vmem:[%s2763_s9 + $0x20] sm:$0xff]  ;;  %v436_v33 = vld [vmem:[%s2167_s18 + $0x10] sm:$0xff] }
  0x17   : > { %629 = vmatprep.mubr.f32.mxu1 %v2038_v3  ;;  %2777 = vst [vmem:[#allocation3_spill] sm:$0xff] %v2204_v23  ;;  %1925 = vmatpush3.bf16.msra.mxu1 %v1924_v24  ;;  %v2232_v34 = vld [vmem:[%s2127_s12 + $0x40] sm:$0xff]  ;;  %v1932_v36 = vpack.c.bf16 %v1236_v32, %v1235_v31  ;;  %v1254_v38 = vld [vmem:[%s2763_s9 + $0xb8] sm:$0xff]  ;;  %v1237_v39 = vld [vmem:[%s2763_s9 + $0x30] sm:$0xff] }
  0x18   : > { %1729 = vmatmul.mubr.msk.f32.gmra.mrb[2].mxu0 %vm486_vm0, %v2139_v8  ;;  %2778 = vst [vmem:[#allocation4_spill] sm:$0xff] %v2232_v34  ;;  %1927 = vmatprep.subr.bf16.mxu1 %v1926_v27  ;;  %v1238_v40 = vld [vmem:[%s2763_s9 + $0x38] sm:$0xff]  ;;  %v2253_v42 = vld [vmem:[%s2127_s12 + $0x48] sm:$0xff]  ;;  %v1934_v43 = vpack.c.bf16 %v1254_v38, %v1253_v37  ;;  %v1255_v45 = vld [vmem:[%s2763_s9 + $0xc0] sm:$0xff] }
  0x19   : > { %611 = vmatprep.mubr.f32.mxu0 %v2038_v3  ;;  %v437_v41 = vld [vmem:[%s2167_s18 + $0x18] sm:$0xff]  ;;  %2779 = vst [vmem:[#allocation5_spill] sm:$0xff] %v2253_v42  ;;  %v1936_v44 = vpack.c.bf16 %v1238_v40, %v1237_v39  ;;  %v1256_v46 = vld [vmem:[%s2763_s9 + $0xc8] sm:$0xff]  ;;  %v1239_v47 = vld [vmem:[%s2763_s9 + $0x40] sm:$0xff] }
  0x1a   : > { %1733 = vmatmul.mubr.msk.f32.gmra.mrb[2].mxu1 %vm486_vm0, %v2161_v12  ;;  %v1240_v48 = vld [vmem:[%s2763_s9 + $0x48] sm:$0xff]  ;;  %v438_v49 = vld [vmem:[%s2167_s18 + $0x20] sm:$0xff]  ;;  %v2274_v50 = vld [vmem:[%s2127_s12 + $0x50] sm:$0xff]  ;;  %v1938_v51 = vpack.c.bf16 %v1256_v46, %v1255_v45 }
  0x1b   : > { %635 = vmatprep.mubr.f32.mxu1 %v2038_v3  ;;  %1929 = vmatpush3.bf16.msra.mxu1 %v1928_v28  ;;  %2780 = vst [vmem:[#allocation6_spill] sm:$0xff] %v2274_v50  ;;  %v1940_v52 = vpack.c.bf16 %v1240_v48, %v1239_v47  ;;  %v1257_v53 = vld [vmem:[%s2763_s9 + $0xd0] sm:$0xff]  ;;  %v1258_v54 = vld [vmem:[%s2763_s9 + $0xd8] sm:$0xff]  ;;  %v439_v57 = vld [vmem:[%s2167_s18 + $0x28] sm:$0xff] }
  0x1c   : > { %1730 = vmatmul.mubr.msk.f32.gmra.mrb[4].mxu0 %vm486_vm0, %v2146_v9  ;;  %1931 = vmatprep.subr.bf16.mxu1 %v1930_v35  ;;  %v1241_v55 = vld [vmem:[%s2763_s9 + $0x50] sm:$0xff]  ;;  %v1242_v56 = vld [vmem:[%s2763_s9 + $0x58] sm:$0xff]  ;;  %v1942_v59 = vpack.c.bf16 %v1258_v54, %v1257_v53  ;;  %v1259_v61 = vld [vmem:[%s2763_s9 + $0xe0] sm:$0xff] }
  0x1d   : > { %617 = vmatprep.mubr.f32.mxu0 %v2038_v3  ;;  %v2295_v58 = vld [vmem:[%s2127_s12 + $0x58] sm:$0xff]  ;;  %v1944_v60 = vpack.c.bf16 %v1242_v56, %v1241_v55  ;;  %v1260_v62 = vld [vmem:[%s2763_s9 + $0xe8] sm:$0xff]  ;;  %v1243_v63 = vld [vmem:[%s2763_s9 + $0x60] sm:$0xff] }
  0x1e   : > { %1734 = vmatmul.mubr.msk.f32.gmra.mrb[4].mxu1 %vm486_vm0, %v2177_v14  ;;  %2781 = vst [vmem:[#allocation7_spill] sm:$0xff] %v2295_v58  ;;  %v1244_v0 = vld [vmem:[%s2763_s9 + $0x68] sm:$0xff]  ;;  %v440_v1 = vld [vmem:[%s2167_s18 + $0x30] sm:$0xff]  ;;  %v2316_v2 = vld [vmem:[%s2127_s12 + $0x60] sm:$0xff] }
  0x1f   : > { %641 = vmatprep.mubr.f32.mxu1 %v2038_v3  ;;  %1933 = vmatpush3.bf16.msra.mxu1 %v1932_v36  ;;  %2782 = vst [vmem:[#allocation8_spill] sm:$0xff] %v2316_v2  ;;  %v1948_v5 = vpack.c.bf16 %v1244_v0, %v1243_v63  ;;  %v441_v6 = vld [vmem:[%s2167_s18 + $0x38] sm:$0xff]  ;;  %v2334_v16 = vld [vmem:[%s2127_s12 + $0x70] sm:$0xff]  ;;  %v443_v17 = vld [vmem:[%s2167_s18 + $0x48] sm:$0xff] }
  0x20   : > { %1731 = vmatmul.mubr.msk.f32.gmra.mrb[6].mxu0 %vm486_vm0, %v2157_v11  ;;  %1935 = vmatprep.subr.bf16.mxu1 %v1934_v43  ;;  %2784 = vst [vmem:[#allocation10_spill] sm:$0xff] %v2334_v16  ;;  %v2343_v18 = vld [vmem:[%s2127_s12 + $0x78] sm:$0xff]  ;;  %v444_v19 = vld [vmem:[%s2167_s18 + $0x50] sm:$0xff]  ;;  %v446_v21 = vld [vmem:[%s2167_s18 + $0x60] sm:$0xff] }
  0x21   : > { %808 = vmatprep.mubr.f32.mxu0 %v2038_v3  ;;  %2785 = vst [vmem:[#allocation11_spill] sm:$0xff] %v2343_v18  ;;  %v445_v20 = vld [vmem:[%s2167_s18 + $0x58] sm:$0xff]  ;;  %v447_v22 = vld [vmem:[%s2167_s18 + $0x68] sm:$0xff]  ;;  %v448_v24 = vld [vmem:[%s2167_s18 + $0x70] sm:$0xff] }
  0x22   : > { %1735 = vmatmul.mubr.msk.f32.gmra.mrb[6].mxu1 %vm486_vm0, %v2204_v23  ;;  %v449_v25 = vld [vmem:[%s2167_s18 + $0x78] sm:$0xff]  ;;  %v2374_v26 = vld [vmem:[%s2369_s14] sm:$0xff]  ;;  %v2380_v27 = vld [vmem:[%s2369_s14 + $0x8] sm:$0xff] }
  0x23   : > { %647 = vmatprep.mubr.f32.mxu1 %v2038_v3  ;;  %1937 = vmatpush3.bf16.msra.mxu1 %v1936_v44  ;;  %v2386_v28 = vld [vmem:[%s2369_s14 + $0x10] sm:$0xff]  ;;  %v2392_v29 = vld [vmem:[%s2369_s14 + $0x18] sm:$0xff]  ;;  %v2398_v30 = vld [vmem:[%s2369_s14 + $0x20] sm:$0xff] }
  0x24   : > { %1744 = vmatmul.mubr.msk.f32.vlgmr.msra.gmra.mrb[0].mxu0 %vm486_vm0, %v434_v13  ;;  %1939 = vmatprep.subr.bf16.mxu1 %v1938_v51  ;;  %v2325_v13 = vld [vmem:[%s2127_s12 + $0x68] sm:$0xff]  ;;  %v2410_v32 = vld [vmem:[%s2369_s14 + $0x30] sm:$0xff]  ;;  %v2422_v35 = vld [vmem:[%s2369_s14 + $0x40] sm:$0xff] }
  0x25   : > { %1761 = vmatpush1.msk.msra.mxu0 %vm957_vm1, %v905_v4  ;;  %814 = vmatprep.mubr.f32.mxu0 %v2038_v3  ;;  %v1946_v4 = vpack.c.bf16 %v1260_v62, %v1259_v61  ;;  %2783 = vst [vmem:[#allocation9_spill] sm:$0xff] %v2325_v13  ;;  %v2404_v31 = vld [vmem:[%s2369_s14 + $0x28] sm:$0xff]  ;;  %v2434_v37 = vld [vmem:[%s2369_s14 + $0x50] sm:$0xff]  ;;  %v2440_v38 = vld [vmem:[%s2369_s14 + $0x58] sm:$0xff] }
  0x26   : > { %1736 = vmatmul.mubr.msk.f32.gmra.mrb[8].mxu1 %vm486_vm0, %v2232_v34  ;;  %v2428_v36 = vld [vmem:[%s2369_s14 + $0x48] sm:$0xff]  ;;  %v2446_v39 = vld [vmem:[%s2369_s14 + $0x60] sm:$0xff]  ;;  %v2464_v43 = vld [vmem:[%s2369_s14 + $0x78] sm:$0xff] }
  0x27   : > { %653 = vmatprep.mubr.f32.mxu1 %v2038_v3  ;;  %1941 = vmatpush3.bf16.msra.mxu1 %v1940_v52  ;;  %v2452_v40 = vld [vmem:[%s2369_s14 + $0x68] sm:$0xff]  ;;  %v1261_v44 = vld [vmem:[%s2763_s9 + $0xf0] sm:$0xff]  ;;  %v1262_v45 = vld [vmem:[%s2763_s9 + $0xf8] sm:$0xff] }
  0x28   : > { %1745 = vmatmul.mubr.msk.f32.gmra.mrb[2].mxu0 %vm486_vm0, %v435_v15  ;;  %1943 = vmatprep.subr.bf16.mxu1 %v1942_v59  ;;  %v442_v15 = vld [vmem:[%s2167_s18 + $0x40] sm:$0xff]  ;;  %v1950_v46 = vpack.c.bf16 %v1262_v45, %v1261_v44  ;;  %v1245_v47 = vld [vmem:[%s2763_s9 + $0x70] sm:$0xff] }
  0x29   : > { %820 = vmatprep.mubr.f32.mxu0 %v2038_v3 }
  0x2a   : > { %1737 = vmatmul.mubr.msk.f32.gmra.mrb[10].mxu1 %vm486_vm0, %v2253_v42 }
  0x2b   : > { %659 = vmatprep.mubr.f32.mxu1 %v2038_v3  ;;  %1945 = vmatpush3.bf16.msra.mxu1 %v1944_v60 }
  0x2c   : > { %1746 = vmatmul.mubr.msk.f32.gmra.mrb[4].mxu0 %vm486_vm0, %v436_v33  ;;  %1947 = vmatprep.subr.bf16.mxu1 %v1946_v4  ;;  %v2416_v33 = vld [vmem:[%s2369_s14 + $0x38] sm:$0xff] }
  0x2d   : > { %826 = vmatprep.mubr.f32.mxu0 %v2038_v3 }
  0x2e   : > { %1738 = vmatmul.mubr.msk.f32.gmra.mrb[12].mxu1 %vm486_vm0, %v2274_v50 }
  0x2f   : > { %665 = vmatprep.mubr.f32.mxu1 %v2038_v3  ;;  %1949 = vmatpush3.bf16.msra.mxu1 %v1948_v5 }
  0x30   : > { %1747 = vmatmul.mubr.msk.f32.gmra.mrb[6].mxu0 %vm486_vm0, %v437_v41  ;;  %v2458_v41 = vld [vmem:[%s2369_s14 + $0x70] sm:$0xff]  ;;  %1951 = vmatprep.subr.bf16.mxu1 %v1950_v46  ;;  %v1155_v46 = vld [vmem:[%s2762_s8] sm:$0x3] }
  0x31   : > { %832 = vmatprep.mubr.f32.mxu0 %v2038_v3 }
  0x32   : > { %1739 = vmatmul.mubr.msk.f32.gmra.mrb[14].mxu1 %vm486_vm0, %v2295_v58 }
  0x33   : > { %671 = vmatprep.mubr.f32.mxu1 %v2038_v3 }
  0x34   : > { %1748 = vmatmul.mubr.msk.f32.gmra.mrb[8].mxu0 %vm486_vm0, %v438_v49  ;;  %v1415_v49 = vld [vmem:[%s2758_s4] sm:$0xf] }
  0x35   : > { %838 = vmatprep.mubr.f32.mxu0 %v2038_v3 }
  0x36   : > { %1740 = vmatmul.mubr.msk.f32.gmra.mrb[16].mxu1 %vm486_vm0, %v2316_v2 }
  0x37   : > { %677 = vmatprep.mubr.f32.mxu1 %v2038_v3 }
  0x38   : > { %1749 = vmatmul.mubr.msk.f32.gmra.mrb[10].mxu0 %vm486_vm0, %v439_v57 }
  0x39   : > { %844 = vmatprep.mubr.f32.mxu0 %v2038_v3 }
  0x3a   : > { %1741 = vmatmul.mubr.msk.f32.gmra.mrb[18].mxu1 %vm486_vm0, %v2325_v13 }
  0x3b   : > { %683 = vmatprep.mubr.f32.mxu1 %v2038_v3 }
  0x3c   : > { %1750 = vmatmul.mubr.msk.f32.gmra.mrb[12].mxu0 %vm486_vm0, %v440_v1 }
  0x3d   : > { %850 = vmatprep.mubr.f32.mxu0 %v2038_v3 }
  0x3e   : > { %1742 = vmatmul.mubr.msk.f32.gmra.mrb[20].mxu1 %vm486_vm0, %v2334_v16 }
  0x3f   : > { %689 = vmatprep.mubr.f32.mxu1 %v2038_v3 }
  0x40   : > { %1751 = vmatmul.mubr.msk.f32.gmra.mrb[14].mxu0 %vm486_vm0, %v441_v6 }
  0x41   : > { %856 = vmatprep.mubr.f32.mxu0 %v2038_v3 }
  0x42   : > { %1743 = vmatmul.mubr.msk.f32.gmra.mrb[22].mxu1 %vm486_vm0, %v2343_v18 }
  0x44   : > { %1752 = vmatmul.mubr.msk.f32.gmra.mrb[16].mxu0 %vm486_vm0, %v442_v15 }
  0x45   : > { %862 = vmatprep.mubr.f32.mxu0 %v2038_v3 }
  0x48   : > { %1753 = vmatmul.mubr.msk.f32.gmra.mrb[18].mxu0 %vm486_vm0, %v443_v17 }
  0x49   : > { %868 = vmatprep.mubr.f32.mxu0 %v2038_v3 }
  0x4c   : > { %1754 = vmatmul.mubr.msk.f32.gmra.mrb[20].mxu0 %vm486_vm0, %v444_v19 }
  0x4d   : > { %874 = vmatprep.mubr.f32.mxu0 %v2038_v3 }
  0x50   : > { %1755 = vmatmul.mubr.msk.f32.gmra.mrb[22].mxu0 %vm486_vm0, %v445_v20 }
  0x51   : > { %880 = vmatprep.mubr.f32.mxu0 %v2038_v3 }
  0x54   : > { %1756 = vmatmul.mubr.msk.f32.gmra.mrb[24].mxu0 %vm486_vm0, %v446_v21 }
  0x55   : > { %886 = vmatprep.mubr.f32.mxu0 %v2038_v3 }
  0x58   : > { %1757 = vmatmul.mubr.msk.f32.gmra.mrb[26].mxu0 %vm486_vm0, %v447_v22 }
  0x59   : > { %892 = vmatprep.mubr.f32.mxu0 %v2038_v3 }
  0x5c   : > { %1758 = vmatmul.mubr.msk.f32.gmra.mrb[28].mxu0 %vm486_vm0, %v448_v24 }
  0x5d   : > { %898 = vmatprep.mubr.f32.mxu0 %v2038_v3 }
  0x60   : > { %1759 = vmatmul.mubr.msk.f32.gmra.mrb[30].mxu0 %vm486_vm0, %v449_v25  ;;  %v1157_v25 = vlaneseq }
  0x61   : > { %1026 = vmatprep.mubr.f32.mxu0 %v2038_v3 }
  0x62   : > { %v1158_v44 = vshrl.u32 %v1157_v25, 7 }
  0x64   : > { %1762 = vmatmul.mubr.msk.f32.vlgmr.msra.gmra.mrb[0].mxu0 %vm908_vm2, %v2374_v26  ;;  %v1159_v45 = vsub.s32 0, %v1158_v44 }
  0x65   : > { %1032 = vmatprep.mubr.f32.mxu0 %v2038_v3 }
  0x68   : > { %1763 = vmatmul.mubr.msk.f32.gmra.mrb[2].mxu0 %vm908_vm2, %v2380_v27 }
  0x69   : > { %1038 = vmatprep.mubr.f32.mxu0 %v2038_v3 }
  0x6c   : > { %1764 = vmatmul.mubr.msk.f32.gmra.mrb[4].mxu0 %vm908_vm2, %v2386_v28 }
  0x6d   : > { %1044 = vmatprep.mubr.f32.mxu0 %v2038_v3 }
  0x70   : > { %1765 = vmatmul.mubr.msk.f32.gmra.mrb[6].mxu0 %vm908_vm2, %v2392_v29 }
  0x71   : > { %1050 = vmatprep.mubr.f32.mxu0 %v2038_v3 }
  0x74   : > { %1766 = vmatmul.mubr.msk.f32.gmra.mrb[8].mxu0 %vm908_vm2, %v2398_v30 }
  0x75   : > { %1056 = vmatprep.mubr.f32.mxu0 %v2038_v3 }
  0x78   : > { %1767 = vmatmul.mubr.msk.f32.gmra.mrb[10].mxu0 %vm908_vm2, %v2404_v31 }
  0x79   : > { %1062 = vmatprep.mubr.f32.mxu0 %v2038_v3 }
  0x7c   : > { %1768 = vmatmul.mubr.msk.f32.gmra.mrb[12].mxu0 %vm908_vm2, %v2410_v32 }
  0x7d   : > { %1068 = vmatprep.mubr.f32.mxu0 %v2038_v3 }
  0x80   : > { %1769 = vmatmul.mubr.msk.f32.gmra.mrb[14].mxu0 %vm908_vm2, %v2416_v33 }
  0x81   : > { %1074 = vmatprep.mubr.f32.mxu0 %v2038_v3 }
  0x84   : > { %1770 = vmatmul.mubr.msk.f32.gmra.mrb[16].mxu0 %vm908_vm2, %v2422_v35 }
  0x85   : > { %1080 = vmatprep.mubr.f32.mxu0 %v2038_v3 }
  0x88   : > { %1771 = vmatmul.mubr.msk.f32.gmra.mrb[18].mxu0 %vm908_vm2, %v2428_v36 }
  0x89   : > { %1086 = vmatprep.mubr.f32.mxu0 %v2038_v3 }
  0x8c   : > { %1772 = vmatmul.mubr.msk.f32.gmra.mrb[20].mxu0 %vm908_vm2, %v2434_v37 }
  0x8d   : > { %1092 = vmatprep.mubr.f32.mxu0 %v2038_v3 }
  0x90   : > { %1773 = vmatmul.mubr.msk.f32.gmra.mrb[22].mxu0 %vm908_vm2, %v2440_v38 }
  0x91   : > { %1098 = vmatprep.mubr.f32.mxu0 %v2038_v3 }
  0x94   : > { %1774 = vmatmul.mubr.msk.f32.gmra.mrb[24].mxu0 %vm908_vm2, %v2446_v39 }
  0x95   : > { %1104 = vmatprep.mubr.f32.mxu0 %v2038_v3 }
  0x98   : > { %1775 = vmatmul.mubr.msk.f32.gmra.mrb[26].mxu0 %vm908_vm2, %v2452_v40 }
  0x99   : > { %1110 = vmatprep.mubr.f32.mxu0 %v2038_v3 }
  0x9c   : > { %1776 = vmatmul.mubr.msk.f32.gmra.mrb[28].mxu0 %vm908_vm2, %v2458_v41 }
  0x9d   : > { %1116 = vmatprep.mubr.f32.mxu0 %v2038_v3  ;;  %v1246_v3 = vld [vmem:[%s2763_s9 + $0x78] sm:$0xff] }
  0x9e   : > { %v1952_v48 = vpack.c.bf16 %v1246_v3, %v1245_v47  ;;  %v1163_v47 = vsub.s32 1, %v1158_v44  ;;  %v2535_v3 = vrot.slane %v1155_v46, %v1159_v45 }
  0xa0   : > { %1777 = vmatmul.mubr.msk.f32.gmra.mrb[30].mxu0 %vm908_vm2, %v2464_v43  ;;  %1953 = vmatpush3.bf16.msra.mxu1 %v1952_v48  ;;  %v2537_v48 = vrot.slane %v1155_v46, %v1163_v47 }
  0xa1   : > { %1896 = vmatprep.subr.msk.mxu1 %vm957_vm1, %v1415_v49 }
  0xe9   : > { %v2484_v51 = vpop.f32.mrb[0].mxu1 }
  0xea   : > { %v2486_v52 = vpop.f32.mrb[1].mxu1 }
  0xed   : > { %v2488_v53 = vpop.f32.mrb[2].mxu1 }
  0xee   : > { %v2490_v54 = vpop.f32.mrb[3].mxu1 }
  0xf1   : > { %v2492_v55 = vpop.f32.mrb[4].mxu1 }
  0xf2   : > { %v2494_v56 = vpop.f32.mrb[5].mxu1 }
  0xf5   : > { %v2496_v57 = vpop.f32.mrb[6].mxu1 }
  0xf6   : > { %v2498_v59 = vpop.f32.mrb[7].mxu1 }
  0xf9   : > { %v2500_v60 = vpop.f32.mrb[8].mxu1 }
  0xfa   : > { %v2502_v61 = vpop.f32.mrb[9].mxu1 }
  0xfd   : > { %v2504_v62 = vpop.f32.mrb[10].mxu1 }
  0xfe   : > { %v2506_v63 = vpop.f32.mrb[11].mxu1 }
 0x101   : > { %v2508_v0 = vpop.f32.mrb[12].mxu1 }
 0x102   : > { %v2510_v1 = vpop.f32.mrb[13].mxu1 }
 0x105   : > { %v2512_v4 = vpop.f32.mrb[14].mxu1 }
 0x106   : > { %v2514_v5 = vpop.f32.mrb[15].mxu1 }
 0x109   : > { %v2516_v6 = vpop.f32.mrb[16].mxu1 }
 0x10a   : > { %v2518_v15 = vpop.f32.mrb[17].mxu1 }
 0x10d   : > { %v2520_v17 = vpop.f32.mrb[18].mxu1 }
 0x10e   : > { %v2522_v19 = vpop.f32.mrb[19].mxu1 }
 0x111   : > { %v2524_v20 = vpop.f32.mrb[20].mxu1 }
 0x112   : > { %v2526_v21 = vpop.f32.mrb[21].mxu1 }
 0x115   : > { %v2528_v22 = vpop.f32.mrb[22].mxu1 }
 0x116   : > { %v2530_v24 = vpop.f32.mrb[23].mxu1 }
 0x137   : > { %v1028_v16 = vpop.f32.mrb[0].mxu0 }
 0x138   : > { %v1167_v18 = vadd.f32 %v2535_v3, %v1028_v16  ;;  %v1030_v2 = vpop.f32.mrb[1].mxu0 }
 0x139   : > { %v1168_v13 = vadd.f32 %v2537_v48, %v1030_v2 }
 0x13a   : > { %v1199_v34 = vmax.f32 %v1167_v18, 0.0 }
 0x13b   : > { %v1200_v50 = vmax.f32 %v1168_v13, 0.0  ;;  %v1034_v58 = vpop.f32.mrb[2].mxu0 }
 0x13c   : > { %v1169_v25 = vadd.f32 %v2535_v3, %v1034_v58  ;;  %v1036_v42 = vpop.f32.mrb[3].mxu0 }
 0x13d   : > { %v1170_v14 = vadd.f32 %v2537_v48, %v1036_v42  ;;  %1334 = vmatprep.mubr.f32.mxu1 %v1200_v50 }
 0x13e   : > { %1335 = vmatmul.mubr.f32.vlgmr.msra.gmra.mrb[24].mxu1 %v1199_v34  ;;  %v1201_v46 = vmax.f32 %v1169_v25, 0.0 }
 0x13f   : > { %v1202_v44 = vmax.f32 %v1170_v14, 0.0  ;;  %v1040_v45 = vpop.f32.mrb[4].mxu0  ;;  %1897 = vmatpush3.msk.msra.mxu1 %vm957_vm1, %v1415_v49 }
 0x140   : > { %v1171_v16 = vadd.f32 %v2535_v3, %v1040_v45  ;;  %v1042_v47 = vpop.f32.mrb[5].mxu0 }
 0x141   : > { %v1172_v2 = vadd.f32 %v2537_v48, %v1042_v47  ;;  %1339 = vmatprep.mubr.f32.mxu1 %v1202_v44 }
 0x142   : > { %1340 = vmatmul.mubr.f32.gmra.mrb[26].mxu1 %v1201_v46  ;;  %v1203_v58 = vmax.f32 %v1171_v16, 0.0 }
 0x143   : > { %v1204_v13 = vmax.f32 %v1172_v2, 0.0  ;;  %v1046_v18 = vpop.f32.mrb[6].mxu0 }
 0x144   : > { %v1173_v23 = vadd.f32 %v2535_v3, %v1046_v18  ;;  %v1048_v42 = vpop.f32.mrb[7].mxu0 }
 0x145   : > { %v1174_v34 = vadd.f32 %v2537_v48, %v1048_v42  ;;  %1344 = vmatprep.mubr.f32.mxu1 %v1204_v13 }
 0x146   : > { %1345 = vmatmul.mubr.f32.gmra.mrb[28].mxu1 %v1203_v58  ;;  %v1205_v49 = vmax.f32 %v1173_v23, 0.0 }
 0x147   : > { %v1206_v14 = vmax.f32 %v1174_v34, 0.0  ;;  %v1052_v50 = vpop.f32.mrb[8].mxu0 }
 0x148   : > { %v1956_v25 = vadd.f32 %v1052_v50, %v2484_v51  ;;  %v1054_v45 = vpop.f32.mrb[9].mxu0 }
 0x149   : > { %v1957_v47 = vadd.f32 %v1054_v45, %v2486_v52  ;;  %1349 = vmatprep.mubr.f32.mxu1 %v1206_v14 }
 0x14a   : > { %v1175_v44 = vadd.f32 %v1956_v25, %v2535_v3  ;;  %1350 = vmatmul.mubr.f32.gmra.mrb[30].mxu1 %v1205_v49 }
 0x14b   : > { %v1176_v46 = vadd.f32 %v1957_v47, %v2537_v48  ;;  %v1058_v16 = vpop.f32.mrb[10].mxu0 }
 0x14c   : > { %v1958_v2 = vadd.f32 %v1058_v16, %v2488_v53  ;;  %v1060_v18 = vpop.f32.mrb[11].mxu0  ;;  %v1207_v42 = vmax.f32 %v1175_v44, 0.0 }
 0x14d   : > { %v1208_v13 = vmax.f32 %v1176_v46, 0.0  ;;  %v1959_v58 = vadd.f32 %v1060_v18, %v2490_v54 }
 0x14e   : > { %v1177_v23 = vadd.f32 %v1958_v2, %v2535_v3 }
 0x14f   : > { %v1178_v51 = vadd.f32 %v1959_v58, %v2537_v48  ;;  %v1064_v34 = vpop.f32.mrb[12].mxu0  ;;  %1354 = vmatprep.mubr.f32.mxu1 %v1208_v13 }
 0x150   : > { %v1960_v52 = vadd.f32 %v1064_v34, %v2492_v55  ;;  %v1066_v14 = vpop.f32.mrb[13].mxu0  ;;  %1355 = vmatmul.mubr.f32.gmra.mrb[32].mxu1 %v1207_v42  ;;  %v1209_v25 = vmax.f32 %v1177_v23, 0.0 }
 0x151   : > { %v1210_v50 = vmax.f32 %v1178_v51, 0.0  ;;  %v1961_v49 = vadd.f32 %v1066_v14, %v2494_v56 }
 0x152   : > { %v1179_v53 = vadd.f32 %v1960_v52, %v2535_v3 }
 0x153   : > { %v1180_v45 = vadd.f32 %v1961_v49, %v2537_v48  ;;  %v1070_v54 = vpop.f32.mrb[14].mxu0  ;;  %1359 = vmatprep.mubr.f32.mxu1 %v1210_v50 }
 0x154   : > { %v1962_v47 = vadd.f32 %v1070_v54, %v2496_v57  ;;  %v1072_v44 = vpop.f32.mrb[15].mxu0  ;;  %1360 = vmatmul.mubr.f32.gmra.mrb[34].mxu1 %v1209_v25  ;;  %v1211_v55 = vmax.f32 %v1179_v53, 0.0 }
 0x155   : > { %v1212_v46 = vmax.f32 %v1180_v45, 0.0  ;;  %v1963_v16 = vadd.f32 %v1072_v44, %v2498_v59 }
 0x156   : > { %v1181_v2 = vadd.f32 %v1962_v47, %v2535_v3 }
 0x157   : > { %v1182_v18 = vadd.f32 %v1963_v16, %v2537_v48  ;;  %v1076_v56 = vpop.f32.mrb[16].mxu0  ;;  %1364 = vmatprep.mubr.f32.mxu1 %v1212_v46 }
 0x158   : > { %v1964_v13 = vadd.f32 %v1076_v56, %v2500_v60  ;;  %v1078_v58 = vpop.f32.mrb[17].mxu0  ;;  %1365 = vmatmul.mubr.f32.gmra.mrb[36].mxu1 %v1211_v55  ;;  %v1213_v57 = vmax.f32 %v1181_v2, 0.0 }
 0x159   : > { %v1214_v42 = vmax.f32 %v1182_v18, 0.0  ;;  %v1965_v23 = vadd.f32 %v1078_v58, %v2502_v61 }
 0x15a   : > { %v1183_v51 = vadd.f32 %v1964_v13, %v2535_v3 }
 0x15b   : > { %v1184_v34 = vadd.f32 %v1965_v23, %v2537_v48  ;;  %v1082_v59 = vpop.f32.mrb[18].mxu0  ;;  %1369 = vmatprep.mubr.f32.mxu1 %v1214_v42 }
 0x15c   : > { %v1966_v52 = vadd.f32 %v1082_v59, %v2504_v62  ;;  %v1084_v14 = vpop.f32.mrb[19].mxu0  ;;  %1370 = vmatmul.mubr.f32.gmra.mrb[38].mxu1 %v1213_v57  ;;  %v1215_v60 = vmax.f32 %v1183_v51, 0.0 }
 0x15d   : > { %v1216_v50 = vmax.f32 %v1184_v34, 0.0  ;;  %v1967_v49 = vadd.f32 %v1084_v14, %v2506_v63 }
 0x15e   : > { %v1185_v25 = vadd.f32 %v1966_v52, %v2535_v3 }
 0x15f   : > { %v1186_v53 = vadd.f32 %v1967_v49, %v2537_v48  ;;  %v1088_v61 = vpop.f32.mrb[20].mxu0  ;;  %1374 = vmatprep.mubr.f32.mxu1 %v1216_v50 }
 0x160   : > { %v1968_v45 = vadd.f32 %v1088_v61, %v2508_v0  ;;  %v1090_v54 = vpop.f32.mrb[21].mxu0  ;;  %1375 = vmatmul.mubr.f32.gmra.mrb[40].mxu1 %v1215_v60  ;;  %v1217_v62 = vmax.f32 %v1185_v25, 0.0 }
 0x161   : > { %v1218_v47 = vmax.f32 %v1186_v53, 0.0  ;;  %v1969_v44 = vadd.f32 %v1090_v54, %v2510_v1 }
 0x162   : > { %v1187_v46 = vadd.f32 %v1968_v45, %v2535_v3 }
 0x163   : > { %v1188_v16 = vadd.f32 %v1969_v44, %v2537_v48  ;;  %v1094_v63 = vpop.f32.mrb[22].mxu0  ;;  %1379 = vmatprep.mubr.f32.mxu1 %v1218_v47 }
 0x164   : > { %v1970_v55 = vadd.f32 %v1094_v63, %v2512_v4  ;;  %v1096_v2 = vpop.f32.mrb[23].mxu0  ;;  %1380 = vmatmul.mubr.f32.gmra.mrb[42].mxu1 %v1217_v62  ;;  %v1219_v0 = vmax.f32 %v1187_v46, 0.0 }
 0x165   : > { %v1220_v18 = vmax.f32 %v1188_v16, 0.0  ;;  %v1971_v56 = vadd.f32 %v1096_v2, %v2514_v5 }
 0x166   : > { %v1189_v13 = vadd.f32 %v1970_v55, %v2535_v3 }
 0x167   : > { %v1190_v58 = vadd.f32 %v1971_v56, %v2537_v48  ;;  %v1100_v1 = vpop.f32.mrb[24].mxu0  ;;  %1384 = vmatprep.mubr.f32.mxu1 %v1220_v18 }
 0x168   : > { %v1972_v42 = vadd.f32 %v1100_v1, %v2516_v6  ;;  %v1102_v23 = vpop.f32.mrb[25].mxu0  ;;  %1385 = vmatmul.mubr.f32.gmra.mrb[44].mxu1 %v1219_v0  ;;  %v1221_v4 = vmax.f32 %v1189_v13, 0.0 }
 0x169   : > { %v1222_v57 = vmax.f32 %v1190_v58, 0.0  ;;  %v1973_v51 = vadd.f32 %v1102_v23, %v2518_v15 }
 0x16a   : > { %v1191_v34 = vadd.f32 %v1972_v42, %v2535_v3 }
 0x16b   : > { %v1192_v59 = vadd.f32 %v1973_v51, %v2537_v48  ;;  %v1106_v5 = vpop.f32.mrb[26].mxu0  ;;  %1389 = vmatprep.mubr.f32.mxu1 %v1222_v57 }
 0x16c   : > { %v1974_v52 = vadd.f32 %v1106_v5, %v2520_v17  ;;  %v1108_v14 = vpop.f32.mrb[27].mxu0  ;;  %1390 = vmatmul.mubr.f32.gmra.mrb[46].mxu1 %v1221_v4  ;;  %v1223_v6 = vmax.f32 %v1191_v34, 0.0 }
 0x16d   : > { %v1224_v50 = vmax.f32 %v1192_v59, 0.0  ;;  %v1975_v49 = vadd.f32 %v1108_v14, %v2522_v19 }
 0x16e   : > { %v1193_v60 = vadd.f32 %v1974_v52, %v2535_v3 }
 0x16f   : > { %v1194_v25 = vadd.f32 %v1975_v49, %v2537_v48  ;;  %v1112_v15 = vpop.f32.mrb[28].mxu0  ;;  %1394 = vmatprep.mubr.f32.mxu1 %v1224_v50 }
 0x170   : > { %v1976_v53 = vadd.f32 %v1112_v15, %v2524_v20  ;;  %v1114_v61 = vpop.f32.mrb[29].mxu0  ;;  %1395 = vmatmul.mubr.f32.gmra.mrb[48].mxu1 %v1223_v6  ;;  %v1225_v17 = vmax.f32 %v1193_v60, 0.0 }
 0x171   : > { %v1226_v45 = vmax.f32 %v1194_v25, 0.0  ;;  %v1977_v54 = vadd.f32 %v1114_v61, %v2526_v21 }
 0x172   : > { %v1195_v47 = vadd.f32 %v1976_v53, %v2535_v3 }
 0x173   : > { %v1196_v44 = vadd.f32 %v1977_v54, %v2537_v48  ;;  %v1118_v19 = vpop.f32.mrb[30].mxu0  ;;  %1399 = vmatprep.mubr.f32.mxu1 %v1226_v45 }
 0x174   : > { %v1978_v62 = vadd.f32 %v1118_v19, %v2528_v22  ;;  %v1120_v46 = vpop.f32.mrb[31].mxu0  ;;  %1400 = vmatmul.mubr.f32.gmra.mrb[50].mxu1 %v1225_v17  ;;  %v1227_v20 = vmax.f32 %v1195_v47, 0.0  ;;  %v2647_v47 = vld [vmem:[%s2757_s3] ss:$0 sm:$0xff] }
 0x175   : > { %v1228_v16 = vmax.f32 %v1196_v44, 0.0  ;;  %v1979_v63 = vadd.f32 %v1120_v46, %v2530_v24  ;;  %v2652_v19 = vld [vmem:[%s2764_s10] ss:$0 sm:$0xff] }
 0x176   : > { %v1197_v55 = vadd.f32 %v1978_v62, %v2535_v3 }
 0x177   : > { %v1198_v2 = vadd.f32 %v1979_v63, %v2537_v48  ;;  %1404 = vmatprep.mubr.f32.mxu1 %v1228_v16  ;;  %v1588_v16 = vmul.f32 %v2647_v47, %v2139_v8  ;;  %v1590_v8 = vmul.f32 %v2647_v47, %v2157_v11  ;;  %v1592_v11 = vmul.f32 %v2647_v47, %v2161_v12  ;;  %v2786_v12 = vld [vmem:[#allocation3_spill] sm:$0xff] }
 0x178   : > { %1405 = vmatmul.mubr.f32.gmra.mrb[52].mxu1 %v1227_v20  ;;  %v1229_v18 = vmax.f32 %v1197_v55, 0.0  ;;  %v1587_v55 = vmul.f32 %v2647_v47, %v2133_v7 }
 0x179   : > { %v1230_v21 = vmax.f32 %v1198_v2, 0.0 }
 0x17b   : > { %1409 = vmatprep.mubr.f32.mxu1 %v1230_v21 }
 0x17c   : > { %1410 = vmatmul.mubr.f32.gmra.mrb[54].mxu1 %v1229_v18 }
 0x17d   : > { %1898 = vmatprep.mubr.msk.f32.mxu1 %vm908_vm2, %v2374_v26 }
 0x180   : > { %1899 = vmatmul.mubr.msk.f32.vlgmr.msra.gmra.mrb[56].mxu1 %vm908_vm2, %v2380_v27 }
 0x181   : > { %1901 = vmatprep.mubr.msk.f32.mxu1 %vm908_vm2, %v2386_v28 }
 0x184   : > { %1902 = vmatmul.mubr.msk.f32.gmra.mrb[58].mxu1 %vm908_vm2, %v2392_v29 }
 0x185   : > { %1904 = vmatprep.mubr.msk.f32.mxu1 %vm908_vm2, %v2398_v30 }
 0x188   : > { %1905 = vmatmul.mubr.msk.f32.gmra.mrb[60].mxu1 %vm908_vm2, %v2404_v31 }
 0x189   : > { %1907 = vmatprep.mubr.msk.f32.mxu1 %vm908_vm2, %v2410_v32 }
 0x18c   : > { %1908 = vmatmul.mubr.msk.f32.gmra.mrb[62].mxu1 %vm908_vm2, %v2416_v33 }
 0x18d   : > { %1910 = vmatprep.mubr.msk.f32.mxu1 %vm908_vm2, %v2422_v35 }
 0x190   : > { %1911 = vmatmul.mubr.msk.f32.gmra.mrb[64].mxu1 %vm908_vm2, %v2428_v36 }
 0x191   : > { %1913 = vmatprep.mubr.msk.f32.mxu1 %vm908_vm2, %v2434_v37 }
 0x194   : > { %1914 = vmatmul.mubr.msk.f32.gmra.mrb[66].mxu1 %vm908_vm2, %v2440_v38 }
 0x195   : > { %1916 = vmatprep.mubr.msk.f32.mxu1 %vm908_vm2, %v2446_v39 }
 0x198   : > { %1917 = vmatmul.mubr.msk.f32.gmra.mrb[68].mxu1 %vm908_vm2, %v2452_v40 }
 0x199   : > { %1919 = vmatprep.mubr.msk.f32.mxu1 %vm908_vm2, %v2458_v41 }
 0x19c   : > { %1920 = vmatmul.mubr.msk.f32.gmra.mrb[70].mxu1 %vm908_vm2, %v2464_v43 }
 0x211   : > { %v1831_v26 = vpop.f32.mrb[24].mxu1 }
 0x212   : > { %v1832_v27 = vpop.f32.mrb[25].mxu1 }
 0x213   : > { %v1833_v28 = vadd.f32 %v1832_v27, %v1831_v26 }
 0x215   : > { %v1834_v29 = vpop.f32.mrb[26].mxu1  ;;  %v1337_v20 = vadd.f32 %v1833_v28, %v2652_v19 }
 0x216   : > { %v1835_v30 = vpop.f32.mrb[27].mxu1 }
 0x217   : > { %v1836_v31 = vadd.f32 %v1835_v30, %v1834_v29  ;;  %v1589_v30 = vmul.f32 %v2647_v47, %v2146_v9  ;;  %v1591_v9 = vmul.f32 %v2647_v47, %v2149_v10 }
 0x219   : > { %v1837_v32 = vpop.f32.mrb[28].mxu1  ;;  %v1342_v46 = vadd.f32 %v1836_v31, %v2652_v19 }
 0x21a   : > { %v1838_v33 = vpop.f32.mrb[29].mxu1 }
 0x21b   : > { %v1839_v35 = vadd.f32 %v1838_v33, %v1837_v32 }
 0x21d   : > { %v1840_v36 = vpop.f32.mrb[30].mxu1  ;;  %v1347_v7 = vadd.f32 %v1839_v35, %v2652_v19 }
 0x21e   : > { %v1841_v37 = vpop.f32.mrb[31].mxu1 }
 0x21f   : > { %v1842_v38 = vadd.f32 %v1841_v37, %v1840_v36 }
 0x221   : > { %v1352_v27 = vadd.f32 %v1842_v38, %v2652_v19 }
 0x223   : > { %v1843_v39 = vpop.f32.mrb[32].mxu1 }
 0x224   : > { %v1844_v40 = vpop.f32.mrb[33].mxu1 }
 0x225   : > { %v1845_v22 = vadd.f32 %v1844_v40, %v1843_v39 }
 0x227   : > { %v1846_v24 = vpop.f32.mrb[34].mxu1  ;;  %v1357_v39 = vadd.f32 %v1845_v22, %v2652_v19 }
 0x228   : > { %v1847_v41 = vpop.f32.mrb[35].mxu1 }
 0x229   : > { %v1848_v3 = vadd.f32 %v1847_v41, %v1846_v24 }
 0x22b   : > { %v1849_v48 = vpop.f32.mrb[36].mxu1  ;;  %v1362_v37 = vadd.f32 %v1848_v3, %v2652_v19 }
 0x22c   : > { %v1850_v43 = vpop.f32.mrb[37].mxu1 }
 0x22d   : > { %v2628_v56 = vadd.f32 %v1850_v43, %v1849_v48  ;;  %v1594_v43 = vmul.f32 %v2647_v47, %v2786_v12 }
 0x22f   : > { %v1852_v0 = vpop.f32.mrb[38].mxu1  ;;  %v1367_v10 = vadd.f32 %v2628_v56, %v2652_v19 }
 0x230   : > { %v1853_v13 = vpop.f32.mrb[39].mxu1 }
 0x231   : > { %v1854_v58 = vadd.f32 %v1853_v13, %v1852_v0  ;;  %v2787_v13 = vld [vmem:[#allocation2_spill] sm:$0xff] }
 0x233   : > { %v1855_v1 = vpop.f32.mrb[40].mxu1  ;;  %v1372_v48 = vadd.f32 %v1854_v58, %v2652_v19 }
 0x234   : > { %v1856_v42 = vpop.f32.mrb[41].mxu1 }
 0x235   : > { %v2630_v23 = vadd.f32 %v1856_v42, %v1855_v1  ;;  %v1593_v1 = vmul.f32 %v2647_v47, %v2787_v13 }
 0x237   : > { %v1858_v57 = vpop.f32.mrb[42].mxu1 }
 0x238   : > { %v1859_v51 = vpop.f32.mrb[43].mxu1 }
 0x239   : > { %v2632_v4 = vadd.f32 %v1859_v51, %v1858_v57 }
 0x23b   : > { %v1861_v34 = vpop.f32.mrb[44].mxu1 }
 0x23c   : > { %v1862_v59 = vpop.f32.mrb[45].mxu1 }
 0x23d   : > { %v2634_v5 = vadd.f32 %v1862_v59, %v1861_v34  ;;  %v1382_v34 = vadd.f32 %v2632_v4, %v2652_v19  ;;  %v2788_v59 = vld [vmem:[#allocation5_spill] sm:$0xff] }
 0x23f   : > { %v1864_v52 = vpop.f32.mrb[46].mxu1 }
 0x240   : > { %v1865_v14 = vpop.f32.mrb[47].mxu1 }
 0x241   : > { %v2636_v50 = vadd.f32 %v1865_v14, %v1864_v52  ;;  %v1596_v52 = vmul.f32 %v2647_v47, %v2788_v59 }
 0x243   : > { %v1867_v49 = vpop.f32.mrb[48].mxu1 }
 0x244   : > { %v1868_v6 = vpop.f32.mrb[49].mxu1 }
 0x245   : > { %v2638_v60 = vadd.f32 %v1868_v6, %v1867_v49  ;;  %v1377_v49 = vadd.f32 %v2630_v23, %v2652_v19  ;;  %v2789_v6 = vld [vmem:[#allocation4_spill] sm:$0xff] }
 0x247   : > { %v1870_v25 = vpop.f32.mrb[50].mxu1 }
 0x248   : > { %v1871_v15 = vpop.f32.mrb[51].mxu1 }
 0x249   : > { %v2640_v53 = vadd.f32 %v1871_v15, %v1870_v25  ;;  %v1595_v25 = vmul.f32 %v2647_v47, %v2789_v6 }
 0x24b   : > { %v1873_v61 = vpop.f32.mrb[52].mxu1 }
 0x24c   : > { %v1874_v45 = vpop.f32.mrb[53].mxu1 }
 0x24d   : > { %v2642_v54 = vadd.f32 %v1874_v45, %v1873_v61 }
 0x24f   : > { %v1876_v17 = vpop.f32.mrb[54].mxu1 }
 0x250   : > { %v1877_v44 = vpop.f32.mrb[55].mxu1 }
 0x251   : > { %v2654_v62 = vadd.f32 %v1877_v44, %v1876_v17  ;;  %v1392_v17 = vadd.f32 %v2636_v50, %v2652_v19  ;;  %v2790_v44 = vld [vmem:[#allocation7_spill] sm:$0xff] }
 0x253   : > { %v1900_v63 = vpop.f32.mrb[56].mxu1 }
 0x254   : > { %v1565_v2 = vadd.f32 %v1900_v63, %v1342_v46  ;;  %v1485_v21 = vpop.f32.mrb[57].mxu1  ;;  %v1598_v46 = vmul.f32 %v2647_v47, %v2790_v44  ;;  %v1387_v63 = vadd.f32 %v2634_v5, %v2652_v19 }
 0x255   : > { %v1564_v18 = vadd.f32 %v1485_v21, %v1337_v20  ;;  %v2791_v20 = vld [vmem:[#allocation6_spill] sm:$0xff] }
 0x256   : > { %v1604_v26 = vadd.f32 %v1588_v16, %v1565_v2 }
 0x257   : > { %v1603_v28 = vadd.f32 %v1587_v55, %v1564_v18  ;;  %v1903_v29 = vpop.f32.mrb[58].mxu1  ;;  %v1597_v55 = vmul.f32 %v2647_v47, %v2791_v20 }
 0x258   : > { %1620 = vst.msk [vmem:[%s2666_s15 + $0x8] sm:$0xff] %vm486_vm0, %v1604_v26  ;;  %v1567_v31 = vadd.f32 %v1903_v29, %v1352_v27  ;;  %v1495_v32 = vpop.f32.mrb[59].mxu1  ;;  %v1402_v26 = vadd.f32 %v2640_v53, %v2652_v19  ;;  %v2792_v27 = vld [vmem:[#allocation9_spill] sm:$0xff]  ;;  %v1397_v29 = vadd.f32 %v2638_v60, %v2652_v19 }
 0x259   : > { %1619 = vst.msk [vmem:[%s2666_s15] sm:$0xff] %vm486_vm0, %v1603_v28  ;;  %v1566_v33 = vadd.f32 %v1495_v32, %v1347_v7  ;;  %v2793_v7 = vld [vmem:[#allocation8_spill] sm:$0xff] }
 0x25a   : > { %v1606_v36 = vadd.f32 %v1590_v8, %v1567_v31  ;;  %v1600_v8 = vmul.f32 %v2647_v47, %v2792_v27 }
 0x25b   : > { %v1605_v38 = vadd.f32 %v1589_v30, %v1566_v33  ;;  %v1906_v35 = vpop.f32.mrb[60].mxu1  ;;  %v1599_v30 = vmul.f32 %v2647_v47, %v2793_v7 }
 0x25c   : > { %1622 = vst.msk [vmem:[%s2666_s15 + $0x18] sm:$0xff] %vm486_vm0, %v1606_v36  ;;  %v1569_v40 = vadd.f32 %v1906_v35, %v1362_v37  ;;  %v1505_v24 = vpop.f32.mrb[61].mxu1  ;;  %v1412_v36 = vadd.f32 %v2654_v62, %v2652_v19  ;;  %v2794_v37 = vld [vmem:[#allocation11_spill] sm:$0xff]  ;;  %v1407_v35 = vadd.f32 %v2642_v54, %v2652_v19 }
 0x25d   : > { %1621 = vst.msk [vmem:[%s2666_s15 + $0x10] sm:$0xff] %vm486_vm0, %v1605_v38  ;;  %v1568_v41 = vadd.f32 %v1505_v24, %v1357_v39  ;;  %v1602_v60 = vmul.f32 %v2647_v47, %v2794_v37  ;;  %v2795_v39 = vld [vmem:[#allocation10_spill] sm:$0xff] }
 0x25e   : > { %v1608_v3 = vadd.f32 %v1592_v11, %v1569_v40 }
 0x25f   : > { %v1607_v0 = vadd.f32 %v1591_v9, %v1568_v41  ;;  %v1909_v22 = vpop.f32.mrb[62].mxu1  ;;  %v1601_v9 = vmul.f32 %v2647_v47, %v2795_v39 }
 0x260   : > { %1624 = vst.msk [vmem:[%s2666_s15 + $0x28] sm:$0xff] %vm486_vm0, %v1608_v3  ;;  %v1571_v42 = vadd.f32 %v1909_v22, %v1372_v48  ;;  %v1515_v57 = vpop.f32.mrb[63].mxu1 }
 0x261   : > { %1623 = vst.msk [vmem:[%s2666_s15 + $0x20] sm:$0xff] %vm486_vm0, %v1607_v0  ;;  %v1570_v58 = vadd.f32 %v1515_v57, %v1367_v10 }
 0x262   : > { %v1610_v51 = vadd.f32 %v1594_v43, %v1571_v42 }
 0x263   : > { %v1609_v14 = vadd.f32 %v1593_v1, %v1570_v58  ;;  %v1912_v56 = vpop.f32.mrb[64].mxu1 }
 0x264   : > { %1626 = vst.msk [vmem:[%s2666_s15 + $0x38] sm:$0xff] %vm486_vm0, %v1610_v51  ;;  %v1573_v15 = vadd.f32 %v1912_v56, %v1382_v34  ;;  %v1525_v61 = vpop.f32.mrb[65].mxu1 }
 0x265   : > { %1625 = vst.msk [vmem:[%s2666_s15 + $0x30] sm:$0xff] %vm486_vm0, %v1609_v14  ;;  %v1572_v4 = vadd.f32 %v1525_v61, %v1377_v49 }
 0x266   : > { %v1612_v45 = vadd.f32 %v1596_v52, %v1573_v15 }
 0x267   : > { %v1611_v16 = vadd.f32 %v1595_v25, %v1572_v4  ;;  %v1915_v23 = vpop.f32.mrb[66].mxu1 }
 0x268   : > { %1628 = vst.msk [vmem:[%s2666_s15 + $0x48] sm:$0xff] %vm486_vm0, %v1612_v45  ;;  %v1575_v2 = vadd.f32 %v1915_v23, %v1392_v17  ;;  %v1535_v21 = vpop.f32.mrb[67].mxu1 }
 0x269   : > { %1627 = vst.msk [vmem:[%s2666_s15 + $0x40] sm:$0xff] %vm486_vm0, %v1611_v16  ;;  %v1574_v50 = vadd.f32 %v1535_v21, %v1387_v63 }
 0x26a   : > { %v1614_v18 = vadd.f32 %v1598_v46, %v1575_v2 }
 0x26b   : > { %v1613_v28 = vadd.f32 %v1597_v55, %v1574_v50  ;;  %v1918_v5 = vpop.f32.mrb[68].mxu1 }
 0x26c   : > { %1630 = vst.msk [vmem:[%s2666_s15 + $0x58] sm:$0xff] %vm486_vm0, %v1614_v18  ;;  %v1577_v31 = vadd.f32 %v1918_v5, %v1402_v26  ;;  %v1545_v32 = vpop.f32.mrb[69].mxu1 }
 0x26d   : > { %1629 = vst.msk [vmem:[%s2666_s15 + $0x50] sm:$0xff] %vm486_vm0, %v1613_v28  ;;  %v1576_v53 = vadd.f32 %v1545_v32, %v1397_v29 }
 0x26e   : > { %v1616_v33 = vadd.f32 %v1600_v8, %v1577_v31 }
 0x26f   : > { %v1615_v11 = vadd.f32 %v1599_v30, %v1576_v53  ;;  %v1921_v38 = vpop.f32.mrb[70].mxu1 }
 0x270   : > { %1632 = vst.msk [vmem:[%s2666_s15 + $0x68] sm:$0xff] %vm486_vm0, %v1616_v33  ;;  %v1579_v40 = vadd.f32 %v1921_v38, %v1412_v36  ;;  %v1555_v24 = vpop.f32.mrb[71].mxu1 }
 0x271   : > { %1631 = vst.msk [vmem:[%s2666_s15 + $0x60] sm:$0xff] %vm486_vm0, %v1615_v11  ;;  %v1578_v41 = vadd.f32 %v1555_v24, %v1407_v35 }
 0x272   : > { %v1618_v3 = vadd.f32 %v1602_v60, %v1579_v40 }
 0x273   : > { %v1617_v62 = vadd.f32 %v1601_v9, %v1578_v41 }
 0x274   : > { %1634 = vst.msk [vmem:[%s2666_s15 + $0x78] sm:$0xff] %vm486_vm0, %v1618_v3 }
 0x275   : > { %1633 = vst.msk [vmem:[%s2666_s15 + $0x70] sm:$0xff] %vm486_vm0, %v1617_v62 }
 0x276 PF: > { %s21_s17 = sadd.s32 1, %s2036_s17  }
 0x277   : > { %p18_p4 = scmp.ge.s32.totalorder %s21_s17, 4  }
 0x279   :  { %20 = sbr.rel (!%p18_p4) target bundleno = 1 (0x1), region = 100 }

</bundles_post_ra>
